<compile_context>
chip_gen: v7x
topology: tpu7x:2x2x1
jax: 0.10.0
libtpu: 0.0.40
codegen_flags: <defaults>
</compile_context>

<pallas_src>
import functools

import jax
import jax.numpy as jnp
from jax.experimental import pallas as pl
from jax.experimental.pallas import tpu as pltpu


# ----------------------------------------------------------------------------
# NCHW-style kernel: classes on sublanes, spatial positions on lanes.
# ----------------------------------------------------------------------------
def _focal_loss_nchw_kernel(*refs, gamma, ignore_index, inv_temperature,
                            hw_total, tile_hw, steps_per_split, has_weight,
                            need_count, need_tail_mask):
    """One (1, C, tile_hw) block of logits.

    refs layout (static, from functools.partial flags):
      x_ref (1,C,T) native dtype | t_ref (1,1,T) native int | [w_ref (C,1) f32]
      sum_out (1,1,1) f32 | [cnt_out (1,1,1) f32]
      acc (1,T) f32 scratch | [cnt_acc (1,T) f32 scratch]
    """
    idx = 0
    x_ref = refs[idx]; idx += 1
    t_ref = refs[idx]; idx += 1
    w_ref = None
    if has_weight:
        w_ref = refs[idx]; idx += 1
    sum_out = refs[idx]; idx += 1
    cnt_out = None
    if need_count:
        cnt_out = refs[idx]; idx += 1
    acc_ref = refs[idx]; idx += 1
    cnt_acc = None
    if need_count:
        cnt_acc = refs[idx]; idx += 1

    s = pl.program_id(1)
    h = pl.program_id(2)
    n_h = pl.num_programs(2)

    @pl.when(h == 0)
    def _init():
        acc_ref[...] = jnp.zeros_like(acc_ref)
        if need_count:
            cnt_acc[...] = jnp.zeros_like(cnt_acc)

    x = x_ref[0].astype(jnp.float32)                 # (C, T)
    t = t_ref[0].astype(jnp.int32)                   # (1, T)
    c, tl = x.shape

    lane_valid = None
    if need_tail_mask:
        # Only the ragged last spatial tile can read past the array end; the
        # OOB lanes are zeroed BEFORE the exp so garbage cannot poison sums.
        blk = s * steps_per_split + h
        lane_pos = jax.lax.broadcasted_iota(jnp.int32, (1, tl), 1) + blk * tile_hw
        lane_valid = lane_pos < hw_total
        x = jnp.where(lane_valid, x, 0.0)

    if inv_temperature is not None:
        x = x * jnp.float32(inv_temperature)         # folded 1/temperature

    # log-softmax over the class (sublane) axis.
    xm = jnp.max(x, axis=0, keepdims=True)           # (1, T)
    xs = x - xm                                      # (C, T)
    ex = jnp.exp(xs)                                 # (C, T)
    log_sumex = jnp.log(jnp.sum(ex, axis=0, keepdims=True))   # (1, T)

    # Target "gather" via one-hot compare (classes on sublanes, lanes dense).
    class_ids = jax.lax.broadcasted_iota(jnp.int32, (c, tl), 0)
    onehot = (class_ids == t).astype(jnp.float32)    # (C, T)

    tlogp = jnp.sum(onehot * xs, axis=0, keepdims=True) - log_sumex   # (1, T)
    p = jnp.exp(tlogp)                               # reuse softmax, one (1,T) exp

    if has_weight:
        wt = jnp.sum(onehot * w_ref[...], axis=0, keepdims=True)      # (1, T)
        nll = -wt * tlogp
    else:
        nll = -tlogp

    one_m_p = jnp.maximum(1.0 - p, 0.0)
    if gamma == 2.0:
        focal = one_m_p * one_m_p                    # cheap VPU path (default)
    elif gamma == 1.0:
        focal = one_m_p
    elif gamma == 0.0:
        focal = jnp.ones_like(one_m_p)
    else:
        # General gamma via exp/log on the EUP; (1-p)==0 -> exp(-inf) == 0.
        focal = jnp.exp(jnp.float32(gamma) * jnp.log(one_m_p))
    loss = focal * nll                               # (1, T)

    loss_valid = lane_valid
    if ignore_index is not None:
        not_ignored = t != jnp.int32(ignore_index)
        loss_valid = (not_ignored if loss_valid is None
                      else jnp.logical_and(loss_valid, not_ignored))
    if loss_valid is not None:
        loss = jnp.where(loss_valid, loss, 0.0)

    acc_ref[...] = acc_ref[...] + loss

    if need_count:
        count_valid = t != jnp.int32(ignore_index)
        if need_tail_mask:
            count_valid = jnp.logical_and(count_valid, lane_valid)
        cnt_acc[...] = cnt_acc[...] + count_valid.astype(jnp.float32)

    @pl.when(h == n_h - 1)
    def _finalize():
        # One cross-lane reduce per (batch, split); tiny (1,1) HBM writeback.
        sum_out[0] = jnp.sum(acc_ref[...], axis=1, keepdims=True)
        if need_count:
            cnt_out[0] = jnp.sum(cnt_acc[...], axis=1, keepdims=True)


# ----------------------------------------------------------------------------
# Flat (M, C) kernel: classes on the lane axis -- avoids a wrapper transpose.
# ----------------------------------------------------------------------------
def _focal_loss_flat_kernel(*refs, gamma, ignore_index, inv_temperature,
                            m_total, tile_m, has_weight, need_count,
                            need_tail_mask):
    idx = 0
    x_ref = refs[idx]; idx += 1                      # (Tm, C)
    t_ref = refs[idx]; idx += 1                      # (Tm, 1)
    w_ref = None
    if has_weight:
        w_ref = refs[idx]; idx += 1                  # (1, C)
    sum_out = refs[idx]; idx += 1                    # (1, 1)
    cnt_out = None
    if need_count:
        cnt_out = refs[idx]; idx += 1
    acc_ref = refs[idx]; idx += 1                    # (Tm, 1)
    cnt_acc = None
    if need_count:
        cnt_acc = refs[idx]; idx += 1

    i = pl.program_id(0)
    n_i = pl.num_programs(0)

    @pl.when(i == 0)
    def _init():
        acc_ref[...] = jnp.zeros_like(acc_ref)
        if need_count:
            cnt_acc[...] = jnp.zeros_like(cnt_acc)

    x = x_ref[...].astype(jnp.float32)               # (Tm, C)
    t = t_ref[...].astype(jnp.int32)                 # (Tm, 1)
    tm, c = x.shape

    row_valid = None
    if need_tail_mask:
        row_pos = jax.lax.broadcasted_iota(jnp.int32, (tm, 1), 0) + i * tile_m
        row_valid = row_pos < m_total
        x = jnp.where(row_valid, x, 0.0)

    if inv_temperature is not None:
        x = x * jnp.float32(inv_temperature)

    xm = jnp.max(x, axis=1, keepdims=True)           # (Tm, 1)
    xs = x - xm
    ex = jnp.exp(xs)
    log_sumex = jnp.log(jnp.sum(ex, axis=1, keepdims=True))   # (Tm, 1)

    class_ids = jax.lax.broadcasted_iota(jnp.int32, (tm, c), 1)
    onehot = (class_ids == t).astype(jnp.float32)    # (Tm, C)

    tlogp = jnp.sum(onehot * xs, axis=1, keepdims=True) - log_sumex   # (Tm, 1)
    p = jnp.exp(tlogp)

    if has_weight:
        wt = jnp.sum(onehot * w_ref[...], axis=1, keepdims=True)
        nll = -wt * tlogp
    else:
        nll = -tlogp

    one_m_p = jnp.maximum(1.0 - p, 0.0)
    if gamma == 2.0:
        focal = one_m_p * one_m_p
    elif gamma == 1.0:
        focal = one_m_p
    elif gamma == 0.0:
        focal = jnp.ones_like(one_m_p)
    else:
        focal = jnp.exp(jnp.float32(gamma) * jnp.log(one_m_p))
    loss = focal * nll                               # (Tm, 1)

    loss_valid = row_valid
    if ignore_index is not None:
        not_ignored = t != jnp.int32(ignore_index)
        loss_valid = (not_ignored if loss_valid is None
                      else jnp.logical_and(loss_valid, not_ignored))
    if loss_valid is not None:
        loss = jnp.where(loss_valid, loss, 0.0)

    acc_ref[...] = acc_ref[...] + loss

    if need_count:
        count_valid = t != jnp.int32(ignore_index)
        if need_tail_mask:
            count_valid = jnp.logical_and(count_valid, row_valid)
        cnt_acc[...] = cnt_acc[...] + count_valid.astype(jnp.float32)

    @pl.when(i == n_i - 1)
    def _finalize():
        sum_out[...] = jnp.sum(acc_ref[...], axis=0, keepdims=True)
        if need_count:
            cnt_out[...] = jnp.sum(cnt_acc[...], axis=0, keepdims=True)


# ----------------------------------------------------------------------------
# Wrappers
# ----------------------------------------------------------------------------
def _run_nchw(logits, targets, weight, *, gamma, ignore_index, inv_temperature,
              has_weight, need_count, max_tile_lanes, max_block_bytes):
    n, c = logits.shape[0], logits.shape[1]
    hw = 1
    for d in logits.shape[2:]:
        hw *= d
    # Metadata-only reshapes; native dtypes stay on the wire (no astype pass).
    x3 = logits.reshape(n, c, hw)
    t3 = targets.reshape(n, 1, hw)

    # Lane-tile sizing budgeted against the f32 intermediates (~5x the native
    # block as f32), not just the native bytes: ~512 KiB native blocks keep
    # the live set well inside a 32 MiB scoped-VMEM budget on v5e/v6e/v7x.
    itemsize = jnp.dtype(x3.dtype).itemsize
    if max_tile_lanes is None:
        max_tile_lanes = max(128, (max_block_bytes // max(1, c * itemsize))
                             // 128 * 128)
    tile_hw = hw if hw <= int(max_tile_lanes) else int(max_tile_lanes)
    n_hw = pl.cdiv(hw, tile_hw)
    # TODO(synk): for very large C the (1, C, 128) minimum block plus its f32
    # intermediates can exceed scoped VMEM; that case needs a C-tiled online
    # softmax (two-pass) which is not implemented here.

    # Second parallel axis so v7x's second TensorCore has work when N == 1.
    n_s = 2 if (n == 1 and n_hw >= 2 and n_hw % 2 == 0) else 1
    steps = n_hw // n_s
    need_tail_mask = (hw % tile_hw) != 0

    kernel = functools.partial(
        _focal_loss_nchw_kernel, gamma=gamma, ignore_index=ignore_index,
        inv_temperature=inv_temperature, hw_total=hw, tile_hw=tile_hw,
        steps_per_split=steps, has_weight=has_weight, need_count=need_count,
        need_tail_mask=need_tail_mask)

    in_specs = [
        pl.BlockSpec((1, c, tile_hw), lambda i, s, h: (i, 0, s * steps + h)),
        pl.BlockSpec((1, 1, tile_hw), lambda i, s, h: (i, 0, s * steps + h)),
    ]
    args = [x3, t3]
    if has_weight:
        in_specs.append(pl.BlockSpec((c, 1), lambda i, s, h: (0, 0)))
        args.append(jnp.asarray(weight, jnp.float32).reshape(c, 1))

    n_out = n * n_s
    out_shape = [jax.ShapeDtypeStruct((n_out, 1, 1), jnp.float32)]
    out_specs = [pl.BlockSpec((1, 1, 1), lambda i, s, h: (i * n_s + s, 0, 0))]
    scratch = [pltpu.VMEM((1, tile_hw), jnp.float32)]
    if need_count:
        out_shape.append(jax.ShapeDtypeStruct((n_out, 1, 1), jnp.float32))
        out_specs.append(pl.BlockSpec((1, 1, 1),
                                      lambda i, s, h: (i * n_s + s, 0, 0)))
        scratch.append(pltpu.VMEM((1, tile_hw), jnp.float32))

    outs = pl.pallas_call(
        kernel,
        out_shape=tuple(out_shape),
        grid_spec=pltpu.PrefetchScalarGridSpec(
            num_scalar_prefetch=0,
            grid=(n, n_s, steps),
            in_specs=in_specs,
            out_specs=tuple(out_specs),
            scratch_shapes=scratch),
        compiler_params=pltpu.CompilerParams(
            dimension_semantics=("parallel", "parallel", "arbitrary"),
            vmem_limit_bytes=32 * 1024 * 1024),
    )(*args)

    loss_sum = jnp.sum(outs[0])                      # tiny (N*n_s) reduce
    count = jnp.sum(outs[1]) if need_count else None
    return loss_sum, count, n * hw


def _run_flat(logits, targets, weight, *, gamma, ignore_index, inv_temperature,
              has_weight, need_count, max_block_bytes):
    m, c = logits.shape
    t2 = targets.reshape(m, 1)                       # metadata-only

    itemsize = jnp.dtype(logits.dtype).itemsize
    max_rows = max(8, (max_block_bytes // max(1, c * itemsize)) // 8 * 8)
    tile_m = m if m <= max_rows else int(max_rows)
    n_m = pl.cdiv(m, tile_m)
    need_tail_mask = (m % tile_m) != 0

    kernel = functools.partial(
        _focal_loss_flat_kernel, gamma=gamma, ignore_index=ignore_index,
        inv_temperature=inv_temperature, m_total=m, tile_m=tile_m,
        has_weight=has_weight, need_count=need_count,
        need_tail_mask=need_tail_mask)

    in_specs = [
        pl.BlockSpec((tile_m, c), lambda i: (i, 0)),
        pl.BlockSpec((tile_m, 1), lambda i: (i, 0)),
    ]
    args = [logits, t2]
    if has_weight:
        in_specs.append(pl.BlockSpec((1, c), lambda i: (0, 0)))
        args.append(jnp.asarray(weight, jnp.float32).reshape(1, c))

    out_shape = [jax.ShapeDtypeStruct((1, 1), jnp.float32)]
    out_specs = [pl.BlockSpec((1, 1), lambda i: (0, 0))]
    scratch = [pltpu.VMEM((tile_m, 1), jnp.float32)]
    if need_count:
        out_shape.append(jax.ShapeDtypeStruct((1, 1), jnp.float32))
        out_specs.append(pl.BlockSpec((1, 1), lambda i: (0, 0)))
        scratch.append(pltpu.VMEM((tile_m, 1), jnp.float32))

    outs = pl.pallas_call(
        kernel,
        out_shape=tuple(out_shape),
        grid_spec=pltpu.PrefetchScalarGridSpec(
            num_scalar_prefetch=0,
            grid=(n_m,),
            in_specs=in_specs,
            out_specs=tuple(out_specs),
            scratch_shapes=scratch),
        compiler_params=pltpu.CompilerParams(
            dimension_semantics=("arbitrary",),
            vmem_limit_bytes=32 * 1024 * 1024),
    )(*args)

    loss_sum = outs[0][0, 0]
    count = outs[1][0, 0] if need_count else None
    return loss_sum, count, m


def multiclass_focal_loss_pallas(logits, targets, weight=None, ignore_index=None,
                                 gamma=2.0, reduction="mean", temperature=None,
                                 max_tile_lanes=None, max_block_bytes=512 * 1024):
    """Pallas equivalent of multiclass_focal_loss (reduction 'mean' / 'sum')."""
    if reduction not in ("mean", "sum"):
        # TODO(synk): reduction='none' returns a dynamically-sized
        # (ignore-filtered) per-element tensor in torch; not expressible with
        # static JAX shapes.
        raise NotImplementedError("reduction='none' not supported in this kernel")

    logits = jnp.asarray(logits)
    targets = jnp.asarray(targets)
    gamma = float(gamma)
    ignore_index = None if ignore_index is None else int(ignore_index)
    inv_temperature = None if temperature is None else 1.0 / float(temperature)
    has_weight = weight is not None
    # torch only drops ignored rows from the loss AND the denominator when
    # ignore_index >= 0; a negative ignore_index only zeroes the loss (count
    # stays the full element count), so the count accumulator is not needed.
    need_count = (reduction == "mean" and ignore_index is not None
                  and ignore_index >= 0)

    if logits.ndim > 2:
        loss_sum, count, total = _run_nchw(
            logits, targets, weight, gamma=gamma, ignore_index=ignore_index,
            inv_temperature=inv_temperature, has_weight=has_weight,
            need_count=need_count, max_tile_lanes=max_tile_lanes,
            max_block_bytes=max_block_bytes)
    else:
        loss_sum, count, total = _run_flat(
            logits, targets, weight, gamma=gamma, ignore_index=ignore_index,
            inv_temperature=inv_temperature, has_weight=has_weight,
            need_count=need_count, max_block_bytes=max_block_bytes)

    if reduction == "sum":
        return loss_sum
    if need_count:
        # torch returns 0.0 when every target is ignored (ignore_index >= 0).
        return jnp.where(count > 0, loss_sum / count, jnp.float32(0.0))
    # Denominator is statically known when nothing is filtered out.
    return loss_sum / jnp.float32(total)


class MulticlassFocalLoss:
    """JAX/Pallas port of the PyTorch MulticlassFocalLoss module."""

    def __init__(self, weight=None, ignore_index=None, gamma=2.0,
                 reduction="mean", temperature=None):
        self.weight = weight
        self.ignore_index = ignore_index
        self.gamma = gamma
        self.reduction = reduction
        self.temperature = temperature

    def __call__(self, inputs, targets):
        return multiclass_focal_loss_pallas(
            inputs, targets, self.weight, self.ignore_index,
            self.gamma, self.reduction, self.temperature)


# ----------------------------------------------------------------------------
# Pure-JAX reference mirroring the torch semantics (mean/sum).
# ----------------------------------------------------------------------------
def _reference_focal_loss(logits, targets, weight, ignore_index, gamma,
                          reduction, temperature):
    if logits.ndim > 2:
        c = logits.shape[1]
        perm = (0,) + tuple(range(2, logits.ndim)) + (1,)
        x = jnp.transpose(logits, perm).reshape(-1, c)
        t = targets.reshape(-1)
    else:
        c = logits.shape[1]
        x = logits
        t = targets
    x = x.astype(jnp.float32)
    t = t.astype(jnp.int32)
    if ignore_index is not None and ignore_index >= 0:
        keep = t != ignore_index          # dropped from loss and denominator
    else:
        keep = jnp.ones_like(t, dtype=bool)
    if ignore_index is not None:
        zero_loss = t == ignore_index     # nll_loss zeroes these rows
    else:
        zero_loss = jnp.zeros_like(t, dtype=bool)
    if temperature is not None:
        x = x / temperature
    logp = jax.nn.log_softmax(x, axis=-1)
    safe_t = jnp.clip(t, 0, c - 1)
    tlogp = jnp.take_along_axis(logp, safe_t[:, None], axis=-1)[:, 0]
    w = (jnp.ones((c,), jnp.float32) if weight is None
         else jnp.asarray(weight, jnp.float32))
    nll = -w[safe_t] * tlogp
    focal = (1.0 - jnp.exp(tlogp)) ** gamma
    loss = jnp.where(keep & ~zero_loss, focal * nll, 0.0)
    cnt = jnp.sum(keep.astype(jnp.float32))
    if reduction == "mean":
        return jnp.where(cnt > 0, jnp.sum(loss) / cnt, jnp.float32(0.0))
    return jnp.sum(loss)


if __name__ == "__main__":
    key = jax.random.PRNGKey(0)
    ks = jax.random.split(key, 10)

    # --- test 1: NCHW f32, class weights, ignore_index>=0, 'mean', gamma=2 ---
    N, C, H, W = 2, 4, 16, 16
    logits = jax.random.normal(ks[0], (N, C, H, W), dtype=jnp.float32)
    targets = jax.random.randint(ks[1], (N, H, W), 0, C, dtype=jnp.int32)
    class_weight = jnp.array([1.0, 0.5, 2.0, 1.5], dtype=jnp.float32)
    loss_mod = MulticlassFocalLoss(weight=class_weight, ignore_index=3,
                                   gamma=2.0, reduction="mean")
    out1 = jax.block_until_ready(loss_mod(logits, targets))
    ref1 = _reference_focal_loss(logits, targets, class_weight, 3, 2.0,
                                 "mean", None)
    assert jnp.allclose(out1, ref1, atol=1e-5, rtol=1e-4), (out1, ref1)

    # --- test 2: ragged spatial tail (HW=130, tile=128), temperature,
    #             general gamma, 'sum', no weight / no ignore ---
    N2, C2, H2, W2 = 2, 5, 13, 10
    logits2 = 3.0 * jax.random.normal(ks[2], (N2, C2, H2, W2), dtype=jnp.float32)
    targets2 = jax.random.randint(ks[3], (N2, H2, W2), 0, C2, dtype=jnp.int32)
    out2 = jax.block_until_ready(
        multiclass_focal_loss_pallas(logits2, targets2, weight=None,
                                     ignore_index=None, gamma=1.5,
                                     reduction="sum", temperature=2.0,
                                     max_tile_lanes=128))
    ref2 = _reference_focal_loss(logits2, targets2, None, None, 1.5, "sum", 2.0)
    assert jnp.allclose(out2, ref2, atol=1e-4, rtol=1e-4), (out2, ref2)

    # --- test 3: bf16 logits stay bf16 on the wire (cast to f32 in-kernel) ---
    logits3 = jax.random.normal(ks[4], (N, C, H, W), dtype=jnp.bfloat16)
    targets3 = jax.random.randint(ks[5], (N, H, W), 0, C, dtype=jnp.int32)
    out3 = jax.block_until_ready(
        multiclass_focal_loss_pallas(logits3, targets3, ignore_index=0))
    ref3 = _reference_focal_loss(logits3, targets3, None, 0, 2.0, "mean", None)
    assert jnp.allclose(out3, ref3, atol=2e-3, rtol=2e-3), (out3, ref3)

    # --- test 4: already-flat (M, C) inputs (dedicated kernel, no transpose) ---
    M4, C4 = 37, 6
    logits4 = jax.random.normal(ks[6], (M4, C4), dtype=jnp.float32)
    targets4 = jax.random.randint(ks[7], (M4,), 0, C4, dtype=jnp.int32)
    w4 = jnp.linspace(0.5, 1.5, C4).astype(jnp.float32)
    out4 = jax.block_until_ready(
        multiclass_focal_loss_pallas(logits4, targets4, weight=w4,
                                     ignore_index=2, gamma=2.0,
                                     reduction="mean"))
    ref4 = _reference_focal_loss(logits4, targets4, w4, 2, 2.0, "mean", None)
    assert jnp.allclose(out4, ref4, atol=1e-5, rtol=1e-4), (out4, ref4)

    # --- test 5: N=1 (exercises the spatial parallel split) + negative
    #             ignore_index semantics (loss zeroed, full denominator) ---
    N5, C5, H5, W5 = 1, 3, 16, 16
    logits5 = jax.random.normal(ks[8], (N5, C5, H5, W5), dtype=jnp.float32)
    targets5 = jax.random.randint(ks[9], (N5, H5, W5), 0, C5, dtype=jnp.int32)
    targets5 = targets5.at[0, 0, 0:3].set(-1)
    out5 = jax.block_until_ready(
        multiclass_focal_loss_pallas(logits5, targets5, weight=None,
                                     ignore_index=-1, gamma=2.0,
                                     reduction="mean", max_tile_lanes=128))
    ref5 = _reference_focal_loss(logits5, targets5, None, -1, 2.0, "mean", None)
    assert jnp.allclose(out5, ref5, atol=1e-5, rtol=1e-4), (out5, ref5)

    print("KERNEL_OK")
</pallas_src>

<mosaic_0001>
module attributes {stable_mosaic.version = 11 : i64} {
  func.func @_focal_loss_nchw_kernel(%arg0: i32, %arg1: i32, %arg2: i32, %arg3: memref<1x4x256xf32, #tpu.memory_space<vmem>>, %arg4: memref<1x1x256xi32, #tpu.memory_space<vmem>>, %arg5: memref<4x1xf32, #tpu.memory_space<vmem>>, %arg6: memref<1x1x1xf32, #tpu.memory_space<vmem>>, %arg7: memref<1x1x1xf32, #tpu.memory_space<vmem>>, %arg8: memref<1x256xf32, #tpu.memory_space<vmem>>, %arg9: memref<1x256xf32, #tpu.memory_space<vmem>>) attributes {dimension_semantics = [#tpu.dimension_semantics<parallel>, #tpu.dimension_semantics<parallel>, #tpu.dimension_semantics<arbitrary>], iteration_bounds = array<i64: 2, 1, 1>, scalar_prefetch = 0 : i64, scratch_operands = 2 : i64, tpu.core_type = #tpu.core_type<tc>, window_params = [{transform_indices = @transform_0, window_bounds = array<i64: 1, 4, 256>}, {transform_indices = @transform_1, window_bounds = array<i64: 1, 1, 256>}, {pipeline_mode = #tpu.pipeline_mode<synchronous>, transform_indices = @transform_2, window_bounds = array<i64: 4, 1>}, {transform_indices = @transform_3, window_bounds = array<i64: 1, 1, 1>}, {transform_indices = @transform_4, window_bounds = array<i64: 1, 1, 1>}]} {
    %c0_i32 = arith.constant 0 : i32
    %0 = arith.cmpi eq, %arg2, %c0_i32 : i32
    %1 = arith.extui %0 : i1 to i32
    %c0_i32_0 = arith.constant 0 : i32
    %2 = arith.cmpi ne, %1, %c0_i32_0 : i32
    scf.if %2 {
      %cst_26 = arith.constant 0.000000e+00 : f32
      %56 = vector.broadcast %cst_26 : f32 to vector<1x256xf32>
      %c0_27 = arith.constant 0 : index
      %c0_28 = arith.constant 0 : index
      %57 = vector.load %arg8[%c0_27, %c0_28] : memref<1x256xf32, #tpu.memory_space<vmem>>, vector<1x256xf32>
      tpu.vector_store %arg8[%c0_27, %c0_28], %56 {strides = array<i32>} : memref<1x256xf32, #tpu.memory_space<vmem>>, vector<1x256xf32>,
      %cst_29 = arith.constant 0.000000e+00 : f32
      %58 = vector.broadcast %cst_29 : f32 to vector<1x256xf32>
      %c0_30 = arith.constant 0 : index
      %c0_31 = arith.constant 0 : index
      %59 = vector.load %arg9[%c0_30, %c0_31] : memref<1x256xf32, #tpu.memory_space<vmem>>, vector<1x256xf32>
      tpu.vector_store %arg9[%c0_30, %c0_31], %58 {strides = array<i32>} : memref<1x256xf32, #tpu.memory_space<vmem>>, vector<1x256xf32>,
    } else {
    }
    %c0 = arith.constant 0 : index
    %c0_1 = arith.constant 0 : index
    %c0_2 = arith.constant 0 : index
    %3 = vector.load %arg3[%c0, %c0_1, %c0_2] : memref<1x4x256xf32, #tpu.memory_space<vmem>>, vector<1x4x256xf32>
    %4 = vector.shape_cast %3 : vector<1x4x256xf32> to vector<4x256xf32>
    %c0_3 = arith.constant 0 : index
    %c0_4 = arith.constant 0 : index
    %c0_5 = arith.constant 0 : index
    %5 = vector.load %arg4[%c0_3, %c0_4, %c0_5] : memref<1x1x256xi32, #tpu.memory_space<vmem>>, vector<1x1x256xi32>
    %6 = vector.shape_cast %5 : vector<1x1x256xi32> to vector<1x256xi32>
    %cst = arith.constant dense<0xFF800000> : vector<256xf32>
    %7 = vector.multi_reduction <maximumf>, %4, %cst [0] : vector<4x256xf32> to vector<256xf32>
    %8 = vector.shape_cast %7 : vector<256xf32> to vector<1x256xf32>
    %9 = vector.broadcast %8 : vector<1x256xf32> to vector<4x256xf32>
    %10 = arith.subf %4, %9 : vector<4x256xf32>
    %11 = math.exp %10 : vector<4x256xf32>
    %cst_6 = arith.constant dense<0.000000e+00> : vector<256xf32>
    %12 = vector.multi_reduction <add>, %11, %cst_6 [0] : vector<4x256xf32> to vector<256xf32>
    %13 = vector.shape_cast %12 : vector<256xf32> to vector<1x256xf32>
    %14 = math.log %13 : vector<1x256xf32>
    %15 = tpu.iota {dimensions = array<i32: 0>} : vector<4x256xi32>
    %16 = vector.broadcast %6 : vector<1x256xi32> to vector<4x256xi32>
    %17 = arith.cmpi eq, %15, %16 : vector<4x256xi32>
    %18 = arith.extui %17 : vector<4x256xi1> to vector<4x256xi32>
    %19 = arith.sitofp %18 : vector<4x256xi32> to vector<4x256xf32>
    %20 = arith.mulf %19, %10 : vector<4x256xf32>
    %cst_7 = arith.constant dense<0.000000e+00> : vector<256xf32>
    %21 = vector.multi_reduction <add>, %20, %cst_7 [0] : vector<4x256xf32> to vector<256xf32>
    %22 = vector.shape_cast %21 : vector<256xf32> to vector<1x256xf32>
    %23 = arith.subf %22, %14 : vector<1x256xf32>
    %24 = math.exp %23 : vector<1x256xf32>
    %c0_8 = arith.constant 0 : index
    %c0_9 = arith.constant 0 : index
    %25 = vector.load %arg5[%c0_8, %c0_9] : memref<4x1xf32, #tpu.memory_space<vmem>>, vector<4x1xf32>
    %26 = vector.broadcast %25 : vector<4x1xf32> to vector<4x256xf32>
    %27 = arith.mulf %19, %26 : vector<4x256xf32>
    %cst_10 = arith.constant dense<0.000000e+00> : vector<256xf32>
    %28 = vector.multi_reduction <add>, %27, %cst_10 [0] : vector<4x256xf32> to vector<256xf32>
    %29 = vector.shape_cast %28 : vector<256xf32> to vector<1x256xf32>
    %cst_11 = arith.constant 0.000000e+00 : f32
    %30 = vector.broadcast %cst_11 : f32 to vector<1x256xf32>
    %31 = arith.subf %30, %29 : vector<1x256xf32>
    %32 = arith.mulf %31, %23 : vector<1x256xf32>
    %cst_12 = arith.constant 1.000000e+00 : f32
    %33 = vector.broadcast %cst_12 : f32 to vector<1x256xf32>
    %34 = arith.subf %33, %24 : vector<1x256xf32>
    %cst_13 = arith.constant 0.000000e+00 : f32
    %35 = vector.broadcast %cst_13 : f32 to vector<1x256xf32>
    %36 = arith.maximumf %34, %35 : vector<1x256xf32>
    %37 = arith.mulf %36, %36 : vector<1x256xf32>
    %38 = arith.mulf %37, %32 : vector<1x256xf32>
    %c3_i32 = arith.constant 3 : i32
    %39 = vector.broadcast %c3_i32 : i32 to vector<1x256xi32>
    %40 = arith.cmpi ne, %6, %39 : vector<1x256xi32>
    %cst_14 = arith.constant 0.000000e+00 : f32
    %41 = vector.broadcast %cst_14 : f32 to vector<1x256xf32>
    %42 = arith.select %40, %38, %41 : vector<1x256xi1>, vector<1x256xf32>
    %c0_15 = arith.constant 0 : index
    %c0_16 = arith.constant 0 : index
    %43 = vector.load %arg8[%c0_15, %c0_16] : memref<1x256xf32, #tpu.memory_space<vmem>>, vector<1x256xf32>
    %44 = arith.addf %43, %42 : vector<1x256xf32>
    %c0_17 = arith.constant 0 : index
    %c0_18 = arith.constant 0 : index
    %45 = vector.load %arg8[%c0_17, %c0_18] : memref<1x256xf32, #tpu.memory_space<vmem>>, vector<1x256xf32>
    tpu.vector_store %arg8[%c0_17, %c0_18], %44 {strides = array<i32>} : memref<1x256xf32, #tpu.memory_space<vmem>>, vector<1x256xf32>,
    %c3_i32_19 = arith.constant 3 : i32
    %46 = vector.broadcast %c3_i32_19 : i32 to vector<1x256xi32>
    %47 = arith.cmpi ne, %6, %46 : vector<1x256xi32>
    %c0_20 = arith.constant 0 : index
    %c0_21 = arith.constant 0 : index
    %48 = vector.load %arg9[%c0_20, %c0_21] : memref<1x256xf32, #tpu.memory_space<vmem>>, vector<1x256xf32>
    %49 = arith.extui %47 : vector<1x256xi1> to vector<1x256xi32>
    %50 = arith.sitofp %49 : vector<1x256xi32> to vector<1x256xf32>
    %51 = arith.addf %48, %50 : vector<1x256xf32>
    %c0_22 = arith.constant 0 : index
    %c0_23 = arith.constant 0 : index
    %52 = vector.load %arg9[%c0_22, %c0_23] : memref<1x256xf32, #tpu.memory_space<vmem>>, vector<1x256xf32>
    tpu.vector_store %arg9[%c0_22, %c0_23], %51 {strides = array<i32>} : memref<1x256xf32, #tpu.memory_space<vmem>>, vector<1x256xf32>,
    %c0_i32_24 = arith.constant 0 : i32
    %53 = arith.cmpi eq, %arg2, %c0_i32_24 : i32
    %54 = arith.extui %53 : i1 to i32
    %c0_i32_25 = arith.constant 0 : i32
    %55 = arith.cmpi ne, %54, %c0_i32_25 : i32
    scf.if %55 {
      %c0_26 = arith.constant 0 : index
      %c0_27 = arith.constant 0 : index
      %56 = vector.load %arg8[%c0_26, %c0_27] : memref<1x256xf32, #tpu.memory_space<vmem>>, vector<1x256xf32>
      %cst_28 = arith.constant dense<0.000000e+00> : vector<1xf32>
      %57 = vector.multi_reduction <add>, %56, %cst_28 [1] : vector<1x256xf32> to vector<1xf32>
      %58 = vector.shape_cast %57 : vector<1xf32> to vector<1x1xf32>
      %c0_29 = arith.constant 0 : index
      %c0_30 = arith.constant 0 : index
      %c0_31 = arith.constant 0 : index
      %59 = vector.load %arg6[%c0_29, %c0_30, %c0_31] : memref<1x1x1xf32, #tpu.memory_space<vmem>>, vector<1x1x1xf32>
      %60 = vector.shape_cast %59 : vector<1x1x1xf32> to vector<1x1xf32>
      %61 = vector.shape_cast %58 : vector<1x1xf32> to vector<1x1x1xf32>
      tpu.vector_store %arg6[%c0_29, %c0_30, %c0_31], %61 {strides = array<i32>} : memref<1x1x1xf32, #tpu.memory_space<vmem>>, vector<1x1x1xf32>,
      %c0_32 = arith.constant 0 : index
      %c0_33 = arith.constant 0 : index
      %62 = vector.load %arg9[%c0_32, %c0_33] : memref<1x256xf32, #tpu.memory_space<vmem>>, vector<1x256xf32>
      %cst_34 = arith.constant dense<0.000000e+00> : vector<1xf32>
      %63 = vector.multi_reduction <add>, %62, %cst_34 [1] : vector<1x256xf32> to vector<1xf32>
      %64 = vector.shape_cast %63 : vector<1xf32> to vector<1x1xf32>
      %c0_35 = arith.constant 0 : index
      %c0_36 = arith.constant 0 : index
      %c0_37 = arith.constant 0 : index
      %65 = vector.load %arg7[%c0_35, %c0_36, %c0_37] : memref<1x1x1xf32, #tpu.memory_space<vmem>>, vector<1x1x1xf32>
      %66 = vector.shape_cast %65 : vector<1x1x1xf32> to vector<1x1xf32>
      %67 = vector.shape_cast %64 : vector<1x1xf32> to vector<1x1x1xf32>
      tpu.vector_store %arg7[%c0_35, %c0_36, %c0_37], %67 {strides = array<i32>} : memref<1x1x1xf32, #tpu.memory_space<vmem>>, vector<1x1x1xf32>,
    } else {
    }
    return
  }
  func.func @transform_0(%arg0: i32, %arg1: i32, %arg2: i32) -> (i32, i32, i32) {
    %c1_i32 = arith.constant 1 : i32
    %0 = arith.muli %arg1, %c1_i32 : i32
    %1 = arith.addi %0, %arg2 : i32
    %c0_i32 = arith.constant 0 : i32
    %c0_i32_0 = arith.constant 0 : i32
    return %arg0, %c0_i32, %1 : i32, i32, i32
  }
  func.func @transform_1(%arg0: i32, %arg1: i32, %arg2: i32) -> (i32, i32, i32) {
    %c1_i32 = arith.constant 1 : i32
    %0 = arith.muli %arg1, %c1_i32 : i32
    %1 = arith.addi %0, %arg2 : i32
    %c0_i32 = arith.constant 0 : i32
    %c0_i32_0 = arith.constant 0 : i32
    return %arg0, %c0_i32, %1 : i32, i32, i32
  }
  func.func @transform_2(%arg0: i32, %arg1: i32, %arg2: i32) -> (i32, i32) {
    %c0_i32 = arith.constant 0 : i32
    %c0_i32_0 = arith.constant 0 : i32
    %c0_i32_1 = arith.constant 0 : i32
    return %c0_i32, %c0_i32_0 : i32, i32
  }
  func.func @transform_3(%arg0: i32, %arg1: i32, %arg2: i32) -> (i32, i32, i32) {
    %c1_i32 = arith.constant 1 : i32
    %0 = arith.muli %arg0, %c1_i32 : i32
    %1 = arith.addi %0, %arg1 : i32
    %c0_i32 = arith.constant 0 : i32
    %c0_i32_0 = arith.constant 0 : i32
    %c0_i32_1 = arith.constant 0 : i32
    return %1, %c0_i32, %c0_i32_0 : i32, i32, i32
  }
  func.func @transform_4(%arg0: i32, %arg1: i32, %arg2: i32) -> (i32, i32, i32) {
    %c1_i32 = arith.constant 1 : i32
    %0 = arith.muli %arg0, %c1_i32 : i32
    %1 = arith.addi %0, %arg1 : i32
    %c0_i32 = arith.constant 0 : i32
    %c0_i32_0 = arith.constant 0 : i32
    %c0_i32_1 = arith.constant 0 : i32
    return %1, %c0_i32, %c0_i32_0 : i32, i32, i32
  }
}

</mosaic_0001>

<bundles_post_ra>
// kernel: tpu_custom_call.1
= control target key start
LH: loop header
LB: loop body
LE: loop exit
PB: predicated region body
PF: predicated region fallthrough
CT: control target
= control target key end

     0   :  { %10 = vsyncpa [#allocation5], 0  ;;  %s1019_s0 = inlined_call_operand.hbm [shape: f32[2,4,256], index: 0, kind: input, shape index: {}]   ;;  %s1020_s1 = inlined_call_operand.vmem [shape: s32[2,1,256], index: 1, kind: input, shape index: {}]   ;;  %s1021_s2 = inlined_call_operand.vmem [shape: f32[4,1], index: 2, kind: input, shape index: {}]   ;;  %s1022_s3 = inlined_call_operand.vmem [shape: f32[2,1,1], index: 3, kind: output, shape index: {0}]   ;;  %s1023_s4 = inlined_call_operand.vmem [shape: f32[2,1,1], index: 4, kind: output, shape index: {1}]  }
   0x1   :  { %12 = vsyncpa [#allocation5 + $0x1], 0  ;;  %s822_s15 = smov 0   ;;  %s824_s16 = smov 0  }
   0x2   :  { %s826_s17 = smov 0   ;;  %s828_s18 = smov 0  }
   0x3   :  { %s830_s19 = smov 0   ;;  %s832_s20 = smov 0  }
   0x4 LB: > { %s625_s21 = sadd.s32 4294967295, %s791_s20   ;;  %s37_s22 = sadd.s32 1, %s787_s19  ;;  %s791_s20 = sphi %s832_s20, %s18_s20   ;;  %s787_s19 = sphi %s830_s19, %s1035_s19   ;;  %s783_s18 = sphi %s828_s18, %s1034_s18   ;;  %s779_s17 = sphi %s826_s17, %s1033_s17   ;;  %s775_s16 = sphi %s824_s16, %s1032_s16   ;;  %s771_s15 = sphi %s822_s15, %s1031_s15  }
   0x5   : > { %p39_p0 = scmp.ge.s32.totalorder %s37_s22, 2  ;;  %s48_s23 = sadd.s32 1, %s779_s17 }
   0x6   : > { %p55_p1 = scmp.ne.s32.totalorder %s779_s17, %s775_s16  ;;  %p56_p2 = scmp.eq.s32.totalorder %s791_s20, 0 }
   0x7   : > { %s1037_s22 = smov (%p39_p0, %s37_s22), 0  ;;  %p61_p4 = scmp.ne.s32.totalorder %s775_s16, %s771_s15 }
   0x8   : > { %p858_p3 = por %p56_p2, %p55_p1  ;;  %s43_s25 = ssub.s32 %s787_s19, %s1037_s22 }
   0x9   : > { %p62_p5 = scmp.eq.s32.totalorder %s625_s21, 0  ;;  %p46_p6 = scmp.eq.s32.totalorder %s43_s25, 0 }
   0xa   : > { %p647_p8 = scmp.lt.s32.totalorder %s791_s20, 2  ;;  %s195_s28 = sand.u32 1, %s779_s17  }
   0xb   : > { %p865_p7 = por %p62_p5, %p61_p4  ;;  %s640_s29 = sshll.u32 %s787_s19, 7 }
   0xc   : > { %s871_s27 = scalar_select %p46_p6, %s779_s17, %s48_s23  }
   0xd   : > { %s629_s30 = sshll.u32 %s195_s28, 3  ;;  %s878_s7 = scalar_lea.hbm %s1019_s0, %s640_s29 }
   0xe   : > { %s199_s8 = scalar_lea.vmem [#allocation4], %s629_s30  ;;  %p882_p9 = pnand %p647_p8, %p858_p3 }
   0xf   : > { %s210_s9 = sshll.u32 %s199_s8, 4  ;;  %s196_s11 = scalar_lea.sflag [#allocation5], %s195_s28  ;;  %s886_s9 = int_to_ptr.vmem [resolvable:$true] %s210_s9 }
  0x10   : > { %s711_s12 = scalar_lea.hbm %s878_s7, 128  ;;  %p713_p13 = pneg %p882_p9 }
  0x11   : > { %p712_p12 = scmp.ne.s32.totalorder %s878_s7, %s711_s12  ;;  %s716_s15 = scalar_lea.hbm %s1019_s0, 256 }
  0x12   : > { %p717_p2 = scmp.lt.u32.totalorder %s878_s7, %s1019_s0  ;;  %p718_p3 = scmp.lt.u32.totalorder %s716_s15, %s711_s12 }
  0x13   : > { %p714_p0 = pnand %p713_p13, %p712_p12  ;;  %p720_p5 = scmp.lt.u32.totalorder %s711_s12, %s878_s7 }
  0x14   : > { %p719_p4 = por %p718_p3, %p717_p2 }
  0x15   : > { %p715_p1 = pneg %p714_p0 }
  0x16   : > { %p721_p6 = por %p720_p5, %p719_p4 }
  0x18   : > { %p722_p8 = pnand %p721_p6, %p715_p1 }
  0x1a   : > { %725 = shalt.err (!%p722_p8)
}
  0x1b   : > { %s726_s24 = scalar_lea.vmem %s886_s9, 128  ;;  %s793_s25 = smov [#allocation4]  }
  0x1c   : > { %p727_p12 = scmp.ne.s32.totalorder %s886_s9, %s726_s24  ;;  %s731_s28 = sshll.u32 %s793_s25, 4  ;;  %s732_s28 = int_to_ptr.vmem [resolvable:$false] %s731_s28 }
  0x1d   : > { %s733_s29 = scalar_lea.vmem %s732_s28, 256  ;;  %p734_p11 = scmp.lt.s32.totalorder %s886_s9, %s732_s28 }
  0x1e   : > { %p729_p0 = pnand %p727_p12, %p713_p13  ;;  %p735_p2 = scmp.lt.s32.totalorder %s733_s29, %s726_s24 }
  0x20   : > { %p730_p10 = pneg %p729_p0  ;;  %p736_p3 = por %p735_p2, %p734_p11 }
  0x22   : > { %p737_p4 = pnand %p736_p3, %p730_p10 }
  0x24   : > { %740 = shalt.err (!%p737_p4)
}
  0x25   : > { %646 = dma.hbm_to_vmem [thread:$0]  (!%p882_p9), %s878_s7, 128, %s886_s9, %s196_s11  }
  0x26   : > { %p1027_p1 = scmp.lt.s32.totalorder %s791_s20, 3  ;;  %p1028_p5 = scmp.ge.s32.totalorder %s791_s20, 1 }
  0x28   : > { %p230_p13 = pnand %p1028_p5, %p1027_p1 }
  0x29   : > { %s235_s30 = sand.u32 (!%p230_p13), 1, %s775_s16  }
  0x2a   : > { %233 = sbr.rel (%p230_p13) target bundleno = 366 (0x16e), region = 32  ;;  %s633_s5 = sshll.u32 (!%p230_p13), %s235_s30, 3 }
  0x2b   : > { %s236_s6 = scalar_lea.sflag (!%p230_p13), [#allocation5], %s235_s30  ;;  %s239_s8 = scalar_lea.vmem (!%p230_p13), [#allocation4], %s633_s5 }
  0x31   : > { %766 = dma.done.wait (%p865_p7), %s236_s6, 128  }
  0x32   : > { %768 = vsyncadd (%p865_p7), %s236_s6, 4294967168  ;;  %p280_p10 = scmp.lt.s32.totalorder %s783_s18, 1  ;;  %v303_v0 = vlaneseq  ;;  %v794_v1 = vmov 0   ;;  %v795_v4 = vmov 0.0   ;;  %v398_v7 = vld [vmem:[%s1021_s2] sm:$0xf] }
  0x33   : > { %699 = vset.pattern.permute.xlu0 %v794_v1  ;;  %v309_v13 = vld [vmem:[%s239_s8] sm:$0xff]  ;;  %vm314_vm3 = vcmask 1043456   ;;  %vm479_vm5 = vcmask 1040384   ;;  %vm485_vm6 = vcmask 0  }
  0x34   : > { %s1039_s18 = smov (!%p280_p10, %s783_s18), 1  ;;  %vm928_vm0 = vcmp.lt.s32.totalorder %v303_v0, 256  ;;  %v932_v3 = vshrl.u32 %v303_v0, 7  ;;  %401 = vperm.xlu0 %699, %v398_v7   ;;  %v312_v14 = vcombine.high %v309_v13, %v309_v13  ;;  %v315_v15 = vsel %vm314_vm3, %v309_v13, -inf }
  0x35   : > { %307 = vst.msk [vmem:[#allocation2] sm:$0x3] %vm928_vm0, %v795_v4  ;;  %308 = vst.msk [vmem:[#allocation3] sm:$0x3] %vm928_vm0, %v795_v4  ;;  %s634_s26 = sshll.u32 %s1039_s18, 1  ;;  %v316_v17 = vrot.slane %v315_v15, 4  ;;  %s297_s15 = scalar_lea.vmem %s1023_s4, %s1039_s18 }
  0x36   : > { %v940_v5 = vsub.s32 0, %v932_v3  ;;  %v943_v6 = vsub.s32 1, %v932_v3  ;;  %s286_s10 = scalar_lea.vmem %s1020_s1, %s634_s26  ;;  %v322_v16 = vsel %vm314_vm3, %v312_v14, -inf  ;;  %s292_s24 = scalar_lea.vmem %s1022_s3, %s1039_s18 }
  0x37   : > { %v951_v8 = vld [vmem:[%s286_s10] sm:$0x3]  ;;  %v323_v18 = vrot.slane %v322_v16, 4  ;;  %v317_v19 = vmax.f32 %v315_v15, %v316_v17 }
  0x38   : > { %v362_v9 = vrot.slane %v951_v8, %v940_v5  ;;  %v366_v10 = vrot.slane %v951_v8, %v943_v6  ;;  %vm432_vm4 = vcmp.ne.s32.totalorder %v951_v8, 3 }
  0x39   : > { %v324_v20 = vmax.f32 %v322_v16, %v323_v18  ;;  %v318_v21 = vrot.slane %v317_v19, 2  ;;  %v637_v24 = vsel %vm432_vm4, 1.0, %v795_v4 }
  0x3a   : > { %vm367_vm1 = vcmp.eq.s32.totalorder %v932_v3, %v362_v9  ;;  %vm368_vm2 = vcmp.eq.s32.totalorder %v932_v3, %v366_v10 }
  0x3b   : > { %v959_v11 = vsel %vm367_vm1, 1.0, %v795_v4  ;;  %v961_v12 = vsel %vm368_vm2, 1.0, %v795_v4  ;;  %v325_v22 = vrot.slane %v324_v20, 2  ;;  %v319_v26 = vmax.f32 %v317_v19, %v318_v21 }
  0x3c   : > { %v459_v23 = vld [vmem:[#allocation3] sm:$0x3] }
  0x3d   : > { %v462_v25 = vadd.f32 %v637_v24, %v459_v23  ;;  %v326_v27 = vmax.f32 %v324_v20, %v325_v22  ;;  %v320_v28 = vrot.slane %v319_v26, 1 }
  0x3f   : > { %463 = vst.msk [vmem:[#allocation3] sm:$0x3] %vm928_vm0, %v462_v25  ;;  %v327_v29 = vrot.slane %v326_v27, 1  ;;  %v321_v30 = vmax.f32 %v319_v26, %v320_v28 }
  0x41   : > { %v328_v31 = vmax.f32 %v326_v27, %v327_v29 }
  0x43   : > { %v331_v37 = vcombine.low %v321_v30, %v328_v31 }
  0x45   : > { %v333_v39 = vsub.f32 %v309_v13, %v331_v37 }
  0x46   : > { %v487_v32 = vld [vmem:[#allocation3] sm:$0x3] }
  0x47   : > { %v492_v33 = vrot.slane %v487_v32, %v940_v5  ;;  %v496_v34 = vrot.slane %v487_v32, %v943_v6  ;;  %v334_v40 = vmul.f32 1.442695, %v333_v39  ;;  %v374_v49 = vcombine.high %v333_v39, %v333_v39 }
  0x48   : > { %v376_v52 = vmul.f32 %v959_v11, %v333_v39 }
  0x49   : > { %v499_v35 = vsel %vm479_vm5, %v492_v33, 0.0  ;;  %v500_v36 = vsel %vm479_vm5, %v496_v34, 0.0  ;;  %701 = vpow2.f32 %v334_v40  ;;  %v377_v53 = vmul.f32 %v961_v12, %v374_v49 }
  0x4a   : > { %v501_v38 = vadd.f32 %v500_v36, %v499_v35  ;;  %v378_v56 = vsel %vm314_vm3, %v376_v52, 0.0 }
  0x4b   : > { %v385_v57 = vsel %vm314_vm3, %v377_v53, 0.0  ;;  %v379_v60 = vrot.slane %v378_v56, 4 }
  0x4c   : > { %502 = vadd.xlane.f32.xlu1 %v501_v38  ;;  %v386_v61 = vrot.slane %v385_v57, 4 }
  0x4d   : > { %v380_v0 = vadd.f32 %v379_v60, %v378_v56 }
  0x4e   : > { %v387_v1 = vadd.f32 %v386_v61, %v385_v57  ;;  %v452_v61 = vld [vmem:[#allocation2] sm:$0x3] }
  0x4f   : > { %v381_v4 = vrot.slane %v380_v0, 2 }
  0x50   : > { %v388_v7 = vrot.slane %v387_v1, 2 }
  0x51   : > { %v382_v9 = vadd.f32 %v381_v4, %v380_v0 }
  0x52   : > { %v389_v10 = vadd.f32 %v388_v7, %v387_v1 }
  0x53   : > { %v702_v41 = vpop.eup %701  ;;  %v383_v13 = vrot.slane %v382_v9, 1 }
  0x54   : > { %v337_v42 = vcombine.high %v702_v41, %v702_v41  ;;  %v339_v43 = vsel %vm314_vm3, %v702_v41, 0.0  ;;  %v390_v15 = vrot.slane %v389_v10, 1 }
  0x55   : > { %v340_v45 = vrot.slane %v339_v43, 4  ;;  %v384_v18 = vadd.f32 %v383_v13, %v382_v9 }
  0x56   : > { %v346_v44 = vsel %vm314_vm3, %v337_v42, 0.0  ;;  %v391_v20 = vadd.f32 %v390_v15, %v389_v10  ;;  %v796_v42 = vmov 1966171168  }
  0x57   : > { %v347_v46 = vrot.slane %v346_v44, 4  ;;  %v341_v47 = vadd.f32 %v340_v45, %v339_v43 }
  0x59   : > { %v348_v48 = vadd.f32 %v347_v46, %v346_v44  ;;  %v342_v50 = vrot.slane %v341_v47, 2 }
  0x5b   : > { %v349_v51 = vrot.slane %v348_v48, 2  ;;  %v343_v54 = vadd.f32 %v342_v50, %v341_v47 }
  0x5d   : > { %v350_v55 = vadd.f32 %v349_v51, %v348_v48  ;;  %v344_v58 = vrot.slane %v343_v54, 1 }
  0x5f   : > { %v351_v59 = vrot.slane %v350_v55, 1  ;;  %v345_v62 = vadd.f32 %v344_v58, %v343_v54 }
  0x61   : > { %v352_v63 = vadd.f32 %v351_v59, %v350_v55  ;;  %703 = vlog2.f32 %v345_v62 }
  0x63   : > { %705 = vlog2.f32 %v352_v63 }
  0x6b   : > { %v704_v14 = vpop.eup %703 }
  0x6c   : > { %v354_v17 = vmul.f32 0.6931472, %v704_v14 }
  0x6d   : > { %v706_v16 = vpop.eup %705 }
  0x6e   : > { %v356_v19 = vmul.f32 0.6931472, %v706_v16  ;;  %v392_v21 = vsub.f32 %v384_v18, %v354_v17 }
  0x70   : > { %v393_v22 = vsub.f32 %v391_v20, %v356_v19  ;;  %v394_v23 = vmul.f32 1.442695, %v392_v21 }
  0x72   : > { %v396_v24 = vmul.f32 1.442695, %v393_v22  ;;  %707 = vpow2.f32 %v394_v23 }
  0x74   : > { %709 = vpow2.f32 %v396_v24 }
  0x7c   : > { %v708_v30 = vpop.eup %707 }
  0x7d   : > { %v424_v38 = vsub.f32 1.0, %v708_v30 }
  0x7e   : > { %v710_v33 = vpop.eup %709 }
  0x7f   : > { %v425_v39 = vsub.f32 1.0, %v710_v33  ;;  %v426_v44 = vmax.f32 %v424_v38, 0.0 }
  0x81   : > { %v427_v45 = vmax.f32 %v425_v39, 0.0  ;;  %v428_v51 = vmul.f32 %v426_v44, %v426_v44 }
  0x83   : > { %v429_v52 = vmul.f32 %v427_v45, %v427_v45 }
  0xb3   : > { %v402_v25 = vpop.permute.xlu0 %401 }
  0xb4   : > { %v404_v26 = vmul.f32 %v959_v11, %v402_v25  ;;  %v405_v27 = vmul.f32 %v961_v12, %v402_v25  ;;  %v437_v11 = vunpack.c.l.s4 %v796_v42 }
  0xb6   : > { %v406_v28 = vsel %vm314_vm3, %v404_v26, 0.0  ;;  %v413_v29 = vsel %vm314_vm3, %v405_v27, 0.0  ;;  %v438_v48 = vunpack.c.0.s8 %v437_v11 }
  0xb7   : > { %v407_v31 = vrot.slane %v406_v28, 4  ;;  %v414_v32 = vrot.slane %v413_v29, 4 }
  0xb8   : > { %v441_v55 = vsub.s32 %v438_v48, %v932_v3 }
  0xb9   : > { %v408_v34 = vadd.f32 %v407_v31, %v406_v28  ;;  %v415_v35 = vadd.f32 %v414_v32, %v413_v29 }
  0xbb   : > { %v409_v36 = vrot.slane %v408_v34, 2  ;;  %v416_v37 = vrot.slane %v415_v35, 2 }
  0xbd   : > { %v410_v40 = vadd.f32 %v409_v36, %v408_v34  ;;  %v417_v41 = vadd.f32 %v416_v37, %v415_v35 }
  0xbf   : > { %v411_v43 = vrot.slane %v410_v40, 1  ;;  %v418_v12 = vrot.slane %v417_v41, 1 }
  0xc1   : > { %v412_v46 = vadd.f32 %v411_v43, %v410_v40  ;;  %v419_v47 = vadd.f32 %v418_v12, %v417_v41 }
  0xc3   : > { %v420_v49 = vsub.f32 0.0, %v412_v46  ;;  %v421_v50 = vsub.f32 0.0, %v419_v47 }
  0xc5   : > { %v422_v53 = vmul.f32 %v420_v49, %v392_v21  ;;  %v423_v54 = vmul.f32 %v421_v50, %v393_v22 }
  0xc7   : > { %v430_v56 = vmul.f32 %v428_v51, %v422_v53  ;;  %v431_v57 = vmul.f32 %v429_v52, %v423_v54 }
  0xc9   : > { %v435_v58 = vcombine.low %v430_v56, %v431_v57 }
  0xcb   : > { %v442_v59 = vrot.slane %v435_v58, %v441_v55 }
  0xcd   : > { %v449_v60 = vrot.slane %v442_v59, %v441_v55 }
  0xcf   : > { %v451_v62 = vsel %vm432_vm4, %v449_v60, 0.0 }
  0xd0   : > { %v453_v63 = vadd.f32 %v452_v61, %v451_v62 }
  0xd2   : > { %458 = vst.msk [vmem:[#allocation2] sm:$0x3] %vm928_vm0, %v453_v63 }
  0xd9   : > { %v467_v0 = vld [vmem:[#allocation2] sm:$0x3]  ;;  %v503_v8 = vpop.xlane.xlu1 %502 }
  0xda   : > { %v472_v1 = vrot.slane %v467_v0, %v940_v5  ;;  %v476_v3 = vrot.slane %v467_v0, %v943_v6  ;;  %504 = vst.msk [vmem:[%s297_s15] sm:$0x1] %vm485_vm6, %v503_v8 }
  0xdc   : > { %v480_v4 = vsel %vm479_vm5, %v472_v1, 0.0  ;;  %v481_v7 = vsel %vm479_vm5, %v476_v3, 0.0 }
  0xdd   : > { %v482_v9 = vadd.f32 %v481_v7, %v480_v4 }
  0xdf   : > { %483 = vadd.xlane.f32.xlu0 %v482_v9 }
 0x16c   : > { %v484_v2 = vpop.xlane.xlu0 %483 }
 0x16d   : > { %486 = vst.msk [vmem:[%s292_s24] sm:$0x1] %vm485_vm6, %v484_v2 }
 0x16e PF: > { %s18_s20 = sadd.s32 1, %s791_s20   ;;  %s1031_s15 = smov %s775_s16 }
 0x16f   : > { %p15_p7 = scmp.ge.s32.totalorder %s18_s20, 4   ;;  %s1032_s16 = smov %s779_s17 }
 0x170   : > { %s1033_s17 = smov %s871_s27  ;;  %s1034_s18 = smov %s787_s19 }
 0x171   : > { %s1035_s19 = smov %s1037_s22  ;;  %17 = sbr.rel (!%p15_p7) target bundleno = 4 (0x4), region = 95 }
 0x178   :  { %540 = vsyncpa [#allocation5], 1 }
 0x179   :  { %542 = vsyncpa [#allocation5 + $0x1], 1 }

</bundles_post_ra>
